<compile_context>
chip_gen: v7x
topology: tpu7x:2x2x1
jax: 0.10.0
libtpu: 0.0.40
codegen_flags: <defaults>
</compile_context>

<pallas_src>
import math
from functools import partial

import jax
import jax.numpy as jnp
from jax import lax
from jax.experimental import pallas as pl
from jax.experimental.pallas import tpu as pltpu


def _round_up(x, m):
    return ((x + m - 1) // m) * m


def _pad2d(a, rows, cols):
    pr, pc = rows - a.shape[0], cols - a.shape[1]
    if pr or pc:
        a = jnp.pad(a, ((0, pr), (0, pc)))
    return a


def _vmem_capacity_bytes():
    try:
        return int(pltpu.get_tpu_info().vmem_capacity_bytes)
    except Exception:
        return 64 * 1024 * 1024  # conservative (v7x per-TensorCore)


def _vmem_bytes(tm, tn, f_pad, d_pad, cdt_bytes, out_bytes):
    # Double-buffered pipeline footprint estimate.
    x_b = 2 * tm * f_pad * cdt_bytes
    wfc_b = 2 * f_pad * d_pad * cdt_bytes
    vecs_b = 2 * 3 * d_pad * 4                     # fc bias, gamma, beta (f32)
    wet_b = 2 * d_pad * tn * cdt_bytes
    bias_b = 2 * tn * 4
    out_b = 2 * tm * tn * out_bytes
    h_b = tm * d_pad * cdt_bytes                   # cached LN output (scratch)
    return x_b + wfc_b + vecs_b + wet_b + bias_b + out_b + h_b


def _select_tiles(n_rows, vocab, f_pad, d_pad, cdt_bytes, out_bytes, budget):
    tm_cap = _round_up(max(n_rows, 8), 8)
    tn_cap = _round_up(max(vocab, 128), 128)
    # tm first (amortizes the re-streamed we^T table), then tn (fewer grid
    # steps / per-step overhead).
    candidates = [(1024, 2048), (512, 2048), (1024, 1024), (512, 1024),
                  (256, 2048), (256, 1024), (256, 512), (128, 512),
                  (128, 256), (64, 256), (8, 128)]
    for tm_c, tn_c in candidates:
        tm = min(tm_c, tm_cap)
        tn = min(tn_c, tn_cap)
        if _vmem_bytes(tm, tn, f_pad, d_pad, cdt_bytes, out_bytes) <= budget:
            return tm, tn
    return min(8, tm_cap), min(128, tn_cap)


def mlm_kernel(x_ref, wfc_ref, bfc_ref, gamma_ref, beta_ref, wet_ref, bias_ref,
               out_ref, h_ref, *, d_true):
    # ---- fc -> GELU -> LayerNorm: once per row tile (vocab axis is the inner
    #      grid axis); result cached in VMEM scratch as bf16 MXU operand. ----
    @pl.when(pl.program_id(1) == 0)
    def _():
        h = jnp.dot(x_ref[...], wfc_ref[...],
                    preferred_element_type=jnp.float32)
        h = h + bfc_ref[...]
        # exact (erf) GELU, matching torch.nn.GELU default, in f32
        h = 0.5 * h * (1.0 + lax.erf(h * (1.0 / math.sqrt(2.0))))
        # LayerNorm over the *true* feature width d_true (eps=1e-5, torch
        # default).  Padded D columns are exactly zero (zero-padded fc weight /
        # bias => fc out 0, GELU(0)=0), so sums over the padded block equal
        # sums over the true columns.  Variance is clamped at 0 to guard the
        # E[h^2]-E[h]^2 cancellation.
        inv_d = 1.0 / d_true
        mean = jnp.sum(h, axis=-1, keepdims=True) * inv_d
        meansq = jnp.sum(h * h, axis=-1, keepdims=True) * inv_d
        var = jnp.maximum(meansq - mean * mean, 0.0)
        hn = (h - mean) * lax.rsqrt(var + 1e-5)
        hn = hn * gamma_ref[...] + beta_ref[...]   # padded cols -> 0 (gamma=0)
        h_ref[...] = hn.astype(h_ref.dtype)

    # ---- logits tile: (tm, Dp) @ (Dp, tn) + (1, tn) ----
    logits = jnp.dot(h_ref[...], wet_ref[...],
                     preferred_element_type=jnp.float32)
    out_ref[...] = (logits + bias_ref[...]).astype(out_ref.dtype)


def prepare_mlm_params(w_fc, b_fc, ln_gamma, ln_beta, word_embeddings, bias, *,
                       compute_dtype=jnp.bfloat16):
    """One-time (hoisted) preprocessing: transpose, F/D zero-pad (256-aligned
    for the 256x256 MXU on v6e/v7x), and cast matmul operands to bf16.  Do NOT
    re-run this per forward call."""
    D, F = w_fc.shape                 # torch nn.Linear layout: (out, in)
    V, D2 = word_embeddings.shape
    assert D == D2
    f_pad = _round_up(F, 256)
    d_pad = _round_up(D, 256)
    return dict(
        wfc_t=_pad2d(w_fc.T, f_pad, d_pad).astype(compute_dtype),   # (Fp, Dp)
        bfc=_pad2d(b_fc.reshape(1, D), 1, d_pad).astype(jnp.float32),
        gamma=_pad2d(ln_gamma.reshape(1, D), 1, d_pad).astype(jnp.float32),
        beta=_pad2d(ln_beta.reshape(1, D), 1, d_pad).astype(jnp.float32),
        we_t=jnp.pad(word_embeddings.T,
                     ((0, d_pad - D), (0, 0))).astype(compute_dtype),  # (Dp, V)
        bias2=bias.reshape(1, V).astype(jnp.float32),
        F=F, D=D, V=V, f_pad=f_pad, d_pad=d_pad,
        compute_dtype=compute_dtype)


def mlm_layer_apply(x, params, *, out_dtype=jnp.float32,
                    tm=None, tn=None, vmem_limit_bytes=None):
    """x: (B, L, F).  Returns logits (B, L, V)."""
    B, L, F = x.shape
    assert F == params["F"]
    V, D = params["V"], params["D"]
    f_pad, d_pad = params["f_pad"], params["d_pad"]
    compute_dtype = params["compute_dtype"]
    N = B * L

    cdt_bytes = jnp.dtype(compute_dtype).itemsize
    out_bytes = jnp.dtype(out_dtype).itemsize

    capacity = _vmem_capacity_bytes()
    if vmem_limit_bytes is None:
        # ~112 MiB on 128 MiB parts (v5e/v6e), ~48 MiB on 64 MiB parts (v7x).
        vmem_limit_bytes = max(capacity - (16 << 20), 32 << 20)
    budget = int(0.75 * vmem_limit_bytes)   # headroom for compiler temporaries

    if tm is None or tn is None:
        sel_tm, sel_tn = _select_tiles(N, V, f_pad, d_pad, cdt_bytes,
                                       out_bytes, budget)
        tm = sel_tm if tm is None else tm
        tn = sel_tn if tn is None else tn

    # Only F is padded on the activation; rows (N) and vocab (V) use Pallas
    # partial edge blocks -> no wrapper-side pad + full-logits slice.
    x2 = _pad2d(x.reshape(N, F), N, f_pad).astype(compute_dtype)

    grid = (pl.cdiv(N, tm), pl.cdiv(V, tn))

    out = pl.pallas_call(
        partial(mlm_kernel, d_true=float(D)),
        out_shape=jax.ShapeDtypeStruct((N, V), out_dtype),
        grid_spec=pltpu.PrefetchScalarGridSpec(
            num_scalar_prefetch=0,
            grid=grid,
            in_specs=[
                pl.BlockSpec((tm, f_pad), lambda i, j: (i, 0)),      # x rows
                pl.BlockSpec((f_pad, d_pad), lambda i, j: (0, 0)),   # fc weight
                pl.BlockSpec((1, d_pad), lambda i, j: (0, 0)),       # fc bias
                pl.BlockSpec((1, d_pad), lambda i, j: (0, 0)),       # ln gamma
                pl.BlockSpec((1, d_pad), lambda i, j: (0, 0)),       # ln beta
                pl.BlockSpec((d_pad, tn), lambda i, j: (0, j)),      # we^T tile
                pl.BlockSpec((1, tn), lambda i, j: (0, j)),          # out bias
            ],
            out_specs=pl.BlockSpec((tm, tn), lambda i, j: (i, j)),
            scratch_shapes=[pltpu.VMEM((tm, d_pad), compute_dtype)],  # cached h
        ),
        compiler_params=pltpu.CompilerParams(
            dimension_semantics=("parallel", "arbitrary"),
            vmem_limit_bytes=int(vmem_limit_bytes)),
    )(x2, params["wfc_t"], params["bfc"], params["gamma"], params["beta"],
      params["we_t"], params["bias2"])

    return out.reshape(B, L, V)


def mlm_layer(x, w_fc, b_fc, ln_gamma, ln_beta, word_embeddings, bias, *,
              out_dtype=jnp.float32, compute_dtype=jnp.bfloat16):
    """Convenience wrapper.  In production, call prepare_mlm_params() once and
    reuse the result across calls (the transpose/pad/cast of the (V, D)
    embedding table is itself an HBM-bound pass)."""
    params = prepare_mlm_params(w_fc, b_fc, ln_gamma, ln_beta,
                                word_embeddings, bias,
                                compute_dtype=compute_dtype)
    return mlm_layer_apply(x, params, out_dtype=out_dtype)


def mlm_layer_ref(x, w_fc, b_fc, ln_gamma, ln_beta, word_embeddings, bias):
    h = jnp.einsum("blf,df->bld", x, w_fc) + b_fc
    h = 0.5 * h * (1.0 + lax.erf(h / jnp.sqrt(2.0)))
    mean = jnp.mean(h, axis=-1, keepdims=True)
    var = jnp.mean((h - mean) ** 2, axis=-1, keepdims=True)
    h = (h - mean) * lax.rsqrt(var + 1e-5) * ln_gamma + ln_beta
    return jnp.einsum("bld,vd->blv", h, word_embeddings) + bias


if __name__ == "__main__":
    B, L = 2, 8
    feat_emb_dim = 32
    word_emb_dim = 32
    vocab_size = 128

    key = jax.random.PRNGKey(0)
    k_x, k_w, k_b, k_we = jax.random.split(key, 4)

    x = jax.random.normal(k_x, (B, L, feat_emb_dim), dtype=jnp.float32)
    # nn.Linear(feat_emb_dim, word_emb_dim): weight (D, F), bias (D,)
    w_fc = jax.random.normal(k_w, (word_emb_dim, feat_emb_dim),
                             dtype=jnp.float32) * 0.05
    b_fc = jax.random.normal(k_b, (word_emb_dim,), dtype=jnp.float32) * 0.05
    # LayerNorm params (affine defaults: ones / zeros)
    ln_gamma = jnp.ones((word_emb_dim,), dtype=jnp.float32)
    ln_beta = jnp.zeros((word_emb_dim,), dtype=jnp.float32)
    # word_embeddings: (vocab_size, word_emb_dim)
    word_embeddings = jax.random.normal(
        k_we, (vocab_size, word_emb_dim), dtype=jnp.float32) * 0.05
    # bias parameter: zeros(1, 1, vocab_size)
    bias = jnp.zeros((1, 1, vocab_size), dtype=jnp.float32)

    params = prepare_mlm_params(w_fc, b_fc, ln_gamma, ln_beta,
                                word_embeddings, bias)
    logits = mlm_layer_apply(x, params)
    logits = jax.block_until_ready(logits)

    ref = mlm_layer_ref(x, w_fc, b_fc, ln_gamma, ln_beta, word_embeddings, bias)
    assert logits.shape == (B, L, vocab_size)
    # bf16 MXU operands (f32 accumulation) -> loosened tolerance vs f32 ref.
    assert jnp.allclose(logits, ref, atol=3e-2, rtol=3e-2), \
        float(jnp.max(jnp.abs(logits - ref)))

    print("KERNEL_OK")
</pallas_src>

<mosaic_0001>
module attributes {stable_mosaic.version = 11 : i64} {
  func.func @mlm_kernel(%arg0: i32, %arg1: i32, %arg2: memref<16x256xbf16, #tpu.memory_space<vmem>>, %arg3: memref<256x256xbf16, #tpu.memory_space<vmem>>, %arg4: memref<1x256xf32, #tpu.memory_space<vmem>>, %arg5: memref<1x256xf32, #tpu.memory_space<vmem>>, %arg6: memref<1x256xf32, #tpu.memory_space<vmem>>, %arg7: memref<256x128xbf16, #tpu.memory_space<vmem>>, %arg8: memref<1x128xf32, #tpu.memory_space<vmem>>, %arg9: memref<16x128xf32, #tpu.memory_space<vmem>>, %arg10: memref<16x256xbf16, #tpu.memory_space<vmem>>) attributes {dimension_semantics = [#tpu.dimension_semantics<parallel>, #tpu.dimension_semantics<arbitrary>], iteration_bounds = array<i64: 1, 1>, scalar_prefetch = 0 : i64, scratch_operands = 1 : i64, tpu.core_type = #tpu.core_type<tc>, window_params = [{transform_indices = @transform_0, window_bounds = array<i64: 16, 256>}, {pipeline_mode = #tpu.pipeline_mode<synchronous>, transform_indices = @transform_1, window_bounds = array<i64: 256, 256>}, {pipeline_mode = #tpu.pipeline_mode<synchronous>, transform_indices = @transform_2, window_bounds = array<i64: 1, 256>}, {pipeline_mode = #tpu.pipeline_mode<synchronous>, transform_indices = @transform_3, window_bounds = array<i64: 1, 256>}, {pipeline_mode = #tpu.pipeline_mode<synchronous>, transform_indices = @transform_4, window_bounds = array<i64: 1, 256>}, {transform_indices = @transform_5, window_bounds = array<i64: 256, 128>}, {transform_indices = @transform_6, window_bounds = array<i64: 1, 128>}, {transform_indices = @transform_7, window_bounds = array<i64: 16, 128>}]} {
    %c0_i32 = arith.constant 0 : i32
    %0 = arith.cmpi eq, %arg1, %c0_i32 : i32
    %1 = arith.extui %0 : i1 to i32
    %c0_i32_0 = arith.constant 0 : i32
    %2 = arith.cmpi ne, %1, %c0_i32_0 : i32
    scf.if %2 {
      %c0_8 = arith.constant 0 : index
      %c0_9 = arith.constant 0 : index
      %10 = vector.load %arg2[%c0_8, %c0_9] : memref<16x256xbf16, #tpu.memory_space<vmem>>, vector<16x256xbf16>
      %c0_10 = arith.constant 0 : index
      %c0_11 = arith.constant 0 : index
      %11 = vector.load %arg3[%c0_10, %c0_11] : memref<256x256xbf16, #tpu.memory_space<vmem>>, vector<256x256xbf16>
      %cst_12 = arith.constant dense<0.000000e+00> : vector<16x256xf32>
      %12 = tpu.matmul %10, %11, %cst_12 {dimension_numbers = #tpu.dot_dimension_numbers<[1], [0], [0], [1], [0, 0, 1, 1], [], []>} : vector<16x256xbf16>, vector<256x256xbf16>, vector<16x256xf32> -> vector<16x256xf32>
      %c0_13 = arith.constant 0 : index
      %c0_14 = arith.constant 0 : index
      %13 = vector.load %arg4[%c0_13, %c0_14] : memref<1x256xf32, #tpu.memory_space<vmem>>, vector<1x256xf32>
      %14 = vector.broadcast %13 : vector<1x256xf32> to vector<16x256xf32>
      %15 = arith.addf %12, %14 : vector<16x256xf32>
      %cst_15 = arith.constant 5.000000e-01 : f32
      %16 = vector.broadcast %cst_15 : f32 to vector<16x256xf32>
      %17 = arith.mulf %16, %15 : vector<16x256xf32>
      %cst_16 = arith.constant 0.707106769 : f32
      %18 = vector.broadcast %cst_16 : f32 to vector<16x256xf32>
      %19 = arith.mulf %15, %18 : vector<16x256xf32>
      %20 = math.erf %19 : vector<16x256xf32>
      %cst_17 = arith.constant 1.000000e+00 : f32
      %21 = vector.broadcast %cst_17 : f32 to vector<16x256xf32>
      %22 = arith.addf %21, %20 : vector<16x256xf32>
      %23 = arith.mulf %17, %22 : vector<16x256xf32>
      %cst_18 = arith.constant dense<0.000000e+00> : vector<16xf32>
      %24 = vector.multi_reduction <add>, %23, %cst_18 [1] : vector<16x256xf32> to vector<16xf32>
      %25 = vector.shape_cast %24 : vector<16xf32> to vector<16x1xf32>
      %cst_19 = arith.constant 3.125000e-02 : f32
      %26 = vector.broadcast %cst_19 : f32 to vector<16x1xf32>
      %27 = arith.mulf %25, %26 : vector<16x1xf32>
      %28 = arith.mulf %23, %23 : vector<16x256xf32>
      %cst_20 = arith.constant dense<0.000000e+00> : vector<16xf32>
      %29 = vector.multi_reduction <add>, %28, %cst_20 [1] : vector<16x256xf32> to vector<16xf32>
      %30 = vector.shape_cast %29 : vector<16xf32> to vector<16x1xf32>
      %cst_21 = arith.constant 3.125000e-02 : f32
      %31 = vector.broadcast %cst_21 : f32 to vector<16x1xf32>
      %32 = arith.mulf %30, %31 : vector<16x1xf32>
      %33 = arith.mulf %27, %27 : vector<16x1xf32>
      %34 = arith.subf %32, %33 : vector<16x1xf32>
      %cst_22 = arith.constant 0.000000e+00 : f32
      %35 = vector.broadcast %cst_22 : f32 to vector<16x1xf32>
      %36 = arith.maximumf %34, %35 : vector<16x1xf32>
      %37 = vector.broadcast %27 : vector<16x1xf32> to vector<16x256xf32>
      %38 = arith.subf %23, %37 : vector<16x256xf32>
      %cst_23 = arith.constant 9.99999974E-6 : f32
      %39 = vector.broadcast %cst_23 : f32 to vector<16x1xf32>
      %40 = arith.addf %36, %39 : vector<16x1xf32>
      %41 = math.rsqrt %40 : vector<16x1xf32>
      %42 = vector.broadcast %41 : vector<16x1xf32> to vector<16x256xf32>
      %43 = arith.mulf %38, %42 : vector<16x256xf32>
      %c0_24 = arith.constant 0 : index
      %c0_25 = arith.constant 0 : index
      %44 = vector.load %arg5[%c0_24, %c0_25] : memref<1x256xf32, #tpu.memory_space<vmem>>, vector<1x256xf32>
      %45 = vector.broadcast %44 : vector<1x256xf32> to vector<16x256xf32>
      %46 = arith.mulf %43, %45 : vector<16x256xf32>
      %c0_26 = arith.constant 0 : index
      %c0_27 = arith.constant 0 : index
      %47 = vector.load %arg6[%c0_26, %c0_27] : memref<1x256xf32, #tpu.memory_space<vmem>>, vector<1x256xf32>
      %48 = vector.broadcast %47 : vector<1x256xf32> to vector<16x256xf32>
      %49 = arith.addf %46, %48 : vector<16x256xf32>
      %50 = arith.truncf %49 : vector<16x256xf32> to vector<16x256xbf16>
      %c0_28 = arith.constant 0 : index
      %c0_29 = arith.constant 0 : index
      %51 = vector.load %arg10[%c0_28, %c0_29] : memref<16x256xbf16, #tpu.memory_space<vmem>>, vector<16x256xbf16>
      tpu.vector_store %arg10[%c0_28, %c0_29], %50 {strides = array<i32>} : memref<16x256xbf16, #tpu.memory_space<vmem>>, vector<16x256xbf16>,
    } else {
    }
    %c0 = arith.constant 0 : index
    %c0_1 = arith.constant 0 : index
    %3 = vector.load %arg10[%c0, %c0_1] : memref<16x256xbf16, #tpu.memory_space<vmem>>, vector<16x256xbf16>
    %c0_2 = arith.constant 0 : index
    %c0_3 = arith.constant 0 : index
    %4 = vector.load %arg7[%c0_2, %c0_3] : memref<256x128xbf16, #tpu.memory_space<vmem>>, vector<256x128xbf16>
    %cst = arith.constant dense<0.000000e+00> : vector<16x128xf32>
    %5 = tpu.matmul %3, %4, %cst {dimension_numbers = #tpu.dot_dimension_numbers<[1], [0], [0], [1], [0, 0, 1, 1], [], []>} : vector<16x256xbf16>, vector<256x128xbf16>, vector<16x128xf32> -> vector<16x128xf32>
    %c0_4 = arith.constant 0 : index
    %c0_5 = arith.constant 0 : index
    %6 = vector.load %arg8[%c0_4, %c0_5] : memref<1x128xf32, #tpu.memory_space<vmem>>, vector<1x128xf32>
    %7 = vector.broadcast %6 : vector<1x128xf32> to vector<16x128xf32>
    %8 = arith.addf %5, %7 : vector<16x128xf32>
    %c0_6 = arith.constant 0 : index
    %c0_7 = arith.constant 0 : index
    %9 = vector.load %arg9[%c0_6, %c0_7] : memref<16x128xf32, #tpu.memory_space<vmem>>, vector<16x128xf32>
    tpu.vector_store %arg9[%c0_6, %c0_7], %8 {strides = array<i32>} : memref<16x128xf32, #tpu.memory_space<vmem>>, vector<16x128xf32>,
    return
  }
  func.func @transform_0(%arg0: i32, %arg1: i32) -> (i32, i32) {
    %c0_i32 = arith.constant 0 : i32
    %c0_i32_0 = arith.constant 0 : i32
    return %arg0, %c0_i32 : i32, i32
  }
  func.func @transform_1(%arg0: i32, %arg1: i32) -> (i32, i32) {
    %c0_i32 = arith.constant 0 : i32
    %c0_i32_0 = arith.constant 0 : i32
    %c0_i32_1 = arith.constant 0 : i32
    return %c0_i32, %c0_i32_0 : i32, i32
  }
  func.func @transform_2(%arg0: i32, %arg1: i32) -> (i32, i32) {
    %c0_i32 = arith.constant 0 : i32
    %c0_i32_0 = arith.constant 0 : i32
    %c0_i32_1 = arith.constant 0 : i32
    return %c0_i32, %c0_i32_0 : i32, i32
  }
  func.func @transform_3(%arg0: i32, %arg1: i32) -> (i32, i32) {
    %c0_i32 = arith.constant 0 : i32
    %c0_i32_0 = arith.constant 0 : i32
    %c0_i32_1 = arith.constant 0 : i32
    return %c0_i32, %c0_i32_0 : i32, i32
  }
  func.func @transform_4(%arg0: i32, %arg1: i32) -> (i32, i32) {
    %c0_i32 = arith.constant 0 : i32
    %c0_i32_0 = arith.constant 0 : i32
    %c0_i32_1 = arith.constant 0 : i32
    return %c0_i32, %c0_i32_0 : i32, i32
  }
  func.func @transform_5(%arg0: i32, %arg1: i32) -> (i32, i32) {
    %c0_i32 = arith.constant 0 : i32
    %c0_i32_0 = arith.constant 0 : i32
    return %c0_i32, %arg1 : i32, i32
  }
  func.func @transform_6(%arg0: i32, %arg1: i32) -> (i32, i32) {
    %c0_i32 = arith.constant 0 : i32
    %c0_i32_0 = arith.constant 0 : i32
    return %c0_i32, %arg1 : i32, i32
  }
  func.func @transform_7(%arg0: i32, %arg1: i32) -> (i32, i32) {
    %c0_i32 = arith.constant 0 : i32
    return %arg0, %arg1 : i32, i32
  }
}

</mosaic_0001>

<bundles_post_ra>
// kernel: tpu_custom_call.1
= control target key start
LH: loop header
LB: loop body
LE: loop exit
PB: predicated region body
PF: predicated region fallthrough
CT: control target
= control target key end

     0   :  { %12 = vsyncpa [#allocation4], 0  ;;  %s1036_s0 = inlined_call_operand.hbm [shape: bf16[16,256], index: 0, kind: input, shape index: {}]   ;;  %s1037_s1 = inlined_call_operand.hbm [shape: bf16[256,256], index: 1, kind: input, shape index: {}]   ;;  %s1038_s2 = inlined_call_operand.vmem [shape: f32[1,256], index: 2, kind: input, shape index: {}]   ;;  %s1039_s3 = inlined_call_operand.vmem [shape: f32[1,256], index: 3, kind: input, shape index: {}]   ;;  %s1040_s4 = inlined_call_operand.vmem [shape: f32[1,256], index: 4, kind: input, shape index: {}]   ;;  %s1041_s5 = inlined_call_operand.hbm [shape: bf16[256,128], index: 5, kind: input, shape index: {}]   ;;  %s1042_s6 = inlined_call_operand.vmem [shape: f32[1,128], index: 6, kind: input, shape index: {}]   ;;  %s1043_s7 = inlined_call_operand.hbm [shape: f32[16,128], index: 7, kind: output, shape index: {}]  }
   0x1   :  { %13 = vsyncpa [#allocation7], 0 }
   0x2   :  { %14 = vsyncpa [#allocation5], 0  ;;  %s878_s24 = smov [#allocation6]   ;;  %s879_s26 = smov [#allocation3]  }
   0x3   :  { %s32_s25 = sshll.u32 %s878_s24, 4  ;;  %s20_s27 = sshll.u32 %s879_s26, 4  ;;  %s33_s25 = int_to_ptr.vmem [resolvable:$true] %s32_s25  ;;  %s926_s27 = int_to_ptr.vmem [resolvable:$true] %s20_s27 }
   0x4   :  { %s784_s30 = scalar_lea.hbm %s1037_s1, 4096 }
   0x5   :  { %p785_p0 = scmp.ne.s32.totalorder %s1037_s1, %s784_s30  ;;  %p788_p1 = scmp.lt.u32.totalorder %s784_s30, %s1037_s1 }
   0x7   :  { %p790_p2 = pnand %p788_p1, %p785_p0 }
   0x9   :  { %793 = shalt.err (!%p790_p2)
}
   0xa   :  { %s794_s12 = scalar_lea.vmem %s33_s25, 4096  ;;  %p799_p4 = scmp.lt.s32.totalorder %s33_s25, %s33_s25 }
   0xb   :  { %p795_p3 = scmp.ne.s32.totalorder %s33_s25, %s794_s12  ;;  %p800_p5 = scmp.lt.s32.totalorder %s794_s12, %s794_s12 }
   0xd   :  { %p801_p6 = por %p800_p5, %p799_p4 }
   0xf   :  { %p802_p7 = pnand %p801_p6, %p795_p3 }
  0x11   :  { %805 = shalt.err (!%p802_p7)
}
  0x12   :  { %s880_s13 = smov 128   ;;  %s881_s14 = smov 8  }
  0x13   :  { %38 = dma.hbm_to_vmem [thread:$0]  %s1037_s1, 4096, %s33_s25, [#allocation7], %s880_s13, %s880_s13, %s881_s14  }
  0x14   :  { %s806_s19 = scalar_lea.hbm %s1036_s0, 256 }
  0x15   :  { %p807_p8 = scmp.ne.s32.totalorder %s1036_s0, %s806_s19  ;;  %p810_p9 = scmp.lt.u32.totalorder %s806_s19, %s1036_s0 }
  0x17   :  { %p812_p10 = pnand %p810_p9, %p807_p8 }
  0x19   :  { %815 = shalt.err (!%p812_p10)
}
  0x1a   :  { %s816_s24 = scalar_lea.vmem %s926_s27, 256  ;;  %p821_p12 = scmp.lt.s32.totalorder %s926_s27, %s926_s27 }
  0x1b   :  { %p817_p11 = scmp.ne.s32.totalorder %s926_s27, %s816_s24  ;;  %p822_p13 = scmp.lt.s32.totalorder %s816_s24, %s816_s24 }
  0x1d   :  { %p823_p0 = por %p822_p13, %p821_p12 }
  0x1f   :  { %p824_p1 = pnand %p823_p0, %p817_p11 }
  0x21   :  { %827 = shalt.err (!%p824_p1)
}
  0x22   :  { %26 = dma.hbm_to_vmem [thread:$0]  %s1036_s0, 256, %s926_s27, [#allocation4], %s880_s13, %s880_s13, %s881_s14  }
  0x23   :  { %s882_s26 = smov [#allocation8]   ;;  %s828_s8 = scalar_lea.hbm %s1041_s5, 2048 }
  0x24   :  { %s50_s28 = sshll.u32 %s882_s26, 4  ;;  %p829_p2 = scmp.ne.s32.totalorder %s1041_s5, %s828_s8  ;;  %s51_s28 = int_to_ptr.vmem [resolvable:$true] %s50_s28 }
  0x25   :  { %p832_p3 = scmp.lt.u32.totalorder %s828_s8, %s1041_s5 }
  0x27   :  { %p834_p4 = pnand %p832_p3, %p829_p2 }
  0x29   :  { %837 = shalt.err (!%p834_p4)
}
  0x2a   :  { %s838_s15 = scalar_lea.vmem %s51_s28, 2048  ;;  %p843_p6 = scmp.lt.s32.totalorder %s51_s28, %s51_s28 }
  0x2b   :  { %p839_p5 = scmp.ne.s32.totalorder %s51_s28, %s838_s15  ;;  %p844_p7 = scmp.lt.s32.totalorder %s838_s15, %s838_s15 }
  0x2d   :  { %p845_p8 = por %p844_p7, %p843_p6 }
  0x2f   :  { %p846_p9 = pnand %p845_p8, %p839_p5 }
  0x31   :  { %849 = shalt.err (!%p846_p9)
}
  0x32   :  { %s883_s0 = smov 64   ;;  %s884_s27 = smov 4  }
  0x33   :  { %56 = dma.hbm_to_vmem [thread:$0]  %s1041_s5, 2048, %s51_s28, [#allocation7], %s883_s0, %s883_s0, %s884_s27  }
  0x34   :  { %872 = dma.done.wait [#allocation4], 256  }
  0x35   :  { %873 = vsyncadd [#allocation4], 4294967040 }
  0x36   :  { %874 = dma.done.wait [#allocation7], 6144  }
  0x37   :  { %875 = vsyncadd [#allocation7], 4294961152  ;;  %v705_v0 = vld [vmem:[#allocation6 + $0x4] ss:$8 sps:$4 sm:$0xff]   ;;  %v707_v1 = vld [vmem:[#allocation6] ss:$8 sps:$4 sm:$0xff]   ;;  %v109_v34 = vlaneseq }
  0x38   :  { %289 = vmatprep.subr.bf16.mxu0 %v705_v0  ;;  %v708_v2 = vld [vmem:[#allocation6 + $0x14] ss:$8 sps:$4 sm:$0xff]   ;;  %v710_v3 = vld [vmem:[#allocation6 + $0x10] ss:$8 sps:$4 sm:$0xff]   ;;  %v711_v4 = vld [vmem:[#allocation6 + $0x24] ss:$8 sps:$4 sm:$0xff]  }
  0x39   :  { %290 = vmatpush1.bf16.msra.mxu0 %v707_v1  ;;  %v713_v5 = vld [vmem:[#allocation6 + $0x20] ss:$8 sps:$4 sm:$0xff]   ;;  %v714_v6 = vld [vmem:[#allocation6 + $0x34] ss:$8 sps:$4 sm:$0xff]   ;;  %v716_v7 = vld [vmem:[#allocation6 + $0x30] ss:$8 sps:$4 sm:$0xff]  }
  0x3a   :  { %291 = vmatprep.subr.bf16.mxu0 %v708_v2  ;;  %v717_v8 = vld [vmem:[#allocation6 + $0x44] ss:$8 sps:$4 sm:$0xff]   ;;  %v719_v9 = vld [vmem:[#allocation6 + $0x40] ss:$8 sps:$4 sm:$0xff]   ;;  %v720_v10 = vld [vmem:[#allocation6 + $0x54] ss:$8 sps:$4 sm:$0xff]  }
  0x3b   :  { %v722_v11 = vld [vmem:[#allocation6 + $0x50] ss:$8 sps:$4 sm:$0xff]   ;;  %v723_v12 = vld [vmem:[#allocation6 + $0x64] ss:$8 sps:$4 sm:$0xff]   ;;  %v725_v13 = vld [vmem:[#allocation6 + $0x60] ss:$8 sps:$4 sm:$0xff]  }
  0x3c   :  { %v726_v14 = vld [vmem:[#allocation6 + $0x74] ss:$8 sps:$4 sm:$0xff]   ;;  %v728_v16 = vld [vmem:[#allocation6 + $0x70] ss:$8 sps:$4 sm:$0xff]   ;;  %v729_v17 = vld [vmem:[#allocation6 + $0x84] ss:$8 sps:$4 sm:$0xff]  }
  0x3d   :  { %292 = vmatpush1.bf16.msra.mxu0 %v710_v3  ;;  %v755_v15 = vld [vmem:[#allocation3 + $0x4] ss:$8 sps:$4 sm:$0xff]   ;;  %v731_v18 = vld [vmem:[#allocation6 + $0x80] ss:$8 sps:$4 sm:$0xff]   ;;  %v734_v20 = vld [vmem:[#allocation6 + $0x90] ss:$8 sps:$4 sm:$0xff]  }
  0x3e   :  { %293 = vmatprep.subr.bf16.mxu0 %v711_v4  ;;  %321 = vmatprep.mubr.bf16.mxu0 %v755_v15  ;;  %v732_v19 = vld [vmem:[#allocation6 + $0x94] ss:$8 sps:$4 sm:$0xff]   ;;  %v735_v21 = vld [vmem:[#allocation6 + $0xa4] ss:$8 sps:$4 sm:$0xff]   ;;  %v737_v22 = vld [vmem:[#allocation6 + $0xa0] ss:$8 sps:$4 sm:$0xff]  }
  0x3f   :  { %v738_v23 = vld [vmem:[#allocation6 + $0xb4] ss:$8 sps:$4 sm:$0xff]   ;;  %v740_v24 = vld [vmem:[#allocation6 + $0xb0] ss:$8 sps:$4 sm:$0xff]   ;;  %v741_v25 = vld [vmem:[#allocation6 + $0xc4] ss:$8 sps:$4 sm:$0xff]  }
  0x40   :  { %v743_v26 = vld [vmem:[#allocation6 + $0xc0] ss:$8 sps:$4 sm:$0xff]   ;;  %v744_v27 = vld [vmem:[#allocation6 + $0xd4] ss:$8 sps:$4 sm:$0xff]   ;;  %v746_v28 = vld [vmem:[#allocation6 + $0xd0] ss:$8 sps:$4 sm:$0xff]  }
  0x41   :  { %294 = vmatpush1.bf16.msra.mxu0 %v713_v5  ;;  %v747_v29 = vld [vmem:[#allocation6 + $0xe4] ss:$8 sps:$4 sm:$0xff]   ;;  %v749_v30 = vld [vmem:[#allocation6 + $0xe0] ss:$8 sps:$4 sm:$0xff]   ;;  %v750_v31 = vld [vmem:[#allocation6 + $0xf4] ss:$8 sps:$4 sm:$0xff]  }
  0x42   :  { %295 = vmatprep.subr.bf16.mxu0 %v714_v6  ;;  %v752_v32 = vld [vmem:[#allocation6 + $0xf0] ss:$8 sps:$4 sm:$0xff]   ;;  %v110_v35 = vshrl.u32 %v109_v34, 7  ;;  %v758_v15 = vld [vmem:[#allocation8 + $0x48] sm:$0xff]   ;;  %s885_s22 = smov [#allocation9]  }
  0x43   :  { %v753_v33 = vld [vmem:[#allocation3] ss:$8 sps:$4 sm:$0xff]   ;;  %s611_s23 = sshll.u32 %s885_s22, 4  ;;  %s612_s23 = int_to_ptr.vmem [resolvable:$true] %s611_s23 }
  0x44   :  { %v975_v36 = vsub.s32 0, %v110_v35  ;;  %v107_v37 = vld [vmem:[%s1038_s2] sm:$0x3]  ;;  %v980_v38 = vsub.s32 1, %v110_v35  ;;  %s850_s24 = scalar_lea.vmem %s612_s23, 256  ;;  %p855_p11 = scmp.lt.s32.totalorder %s612_s23, %s612_s23 }
  0x45   :  { %296 = vmatpush1.bf16.msra.mxu0 %v716_v7  ;;  %p851_p10 = scmp.ne.s32.totalorder %s612_s23, %s850_s24  ;;  %p856_p12 = scmp.lt.s32.totalorder %s850_s24, %s850_s24 }
  0x46   :  { %297 = vmatprep.subr.bf16.mxu0 %v717_v8  ;;  %v112_v39 = vrot.slane %v107_v37, %v975_v36  ;;  %v116_v40 = vrot.slane %v107_v37, %v980_v38 }
  0x47   :  { %p857_p13 = por %p856_p12, %p855_p11 }
  0x49   :  { %298 = vmatpush1.bf16.msra.mxu0 %v719_v9  ;;  %p858_p0 = pnand %p857_p13, %p851_p10 }
  0x4a   :  { %299 = vmatprep.subr.bf16.mxu0 %v720_v10 }
  0x4d   :  { %300 = vmatpush1.bf16.msra.mxu0 %v722_v11 }
  0x4e   :  { %301 = vmatprep.subr.bf16.mxu0 %v723_v12 }
  0x51   :  { %302 = vmatpush1.bf16.msra.mxu0 %v725_v13  ;;  %v756_v13 = vld [vmem:[#allocation8 + $0x40] sm:$0xff]  }
  0x52   :  { %303 = vmatprep.subr.bf16.mxu0 %v726_v14  ;;  %v757_v14 = vld [vmem:[#allocation8] sm:$0xff]   ;;  %675 = vmatprep.subr.bf16.mxu1 %v756_v13 }
  0x53   :  { %676 = vmatpush3.bf16.msra.mxu1 %v757_v14 }
  0x54   :  { %677 = vmatprep.subr.bf16.mxu1 %v758_v15 }
  0x55   :  { %304 = vmatpush1.bf16.msra.mxu0 %v728_v16  ;;  %v759_v16 = vld [vmem:[#allocation8 + $0x8] sm:$0xff]  }
  0x56   :  { %305 = vmatprep.subr.bf16.mxu0 %v729_v17  ;;  %v760_v17 = vld [vmem:[#allocation8 + $0x50] sm:$0xff]  }
  0x57   :  { %678 = vmatpush3.bf16.msra.mxu1 %v759_v16 }
  0x58   :  { %679 = vmatprep.subr.bf16.mxu1 %v760_v17 }
  0x59   :  { %306 = vmatpush1.bf16.msra.mxu0 %v731_v18  ;;  %v761_v18 = vld [vmem:[#allocation8 + $0x10] sm:$0xff]  }
  0x5a   :  { %307 = vmatprep.subr.bf16.mxu0 %v732_v19  ;;  %v762_v19 = vld [vmem:[#allocation8 + $0x58] sm:$0xff]  }
  0x5b   :  { %680 = vmatpush3.bf16.msra.mxu1 %v761_v18 }
  0x5c   :  { %681 = vmatprep.subr.bf16.mxu1 %v762_v19 }
  0x5d   :  { %308 = vmatpush1.bf16.msra.mxu0 %v734_v20  ;;  %v763_v20 = vld [vmem:[#allocation8 + $0x18] sm:$0xff]  }
  0x5e   :  { %309 = vmatprep.subr.bf16.mxu0 %v735_v21  ;;  %v764_v21 = vld [vmem:[#allocation8 + $0x60] sm:$0xff]  }
  0x5f   :  { %682 = vmatpush3.bf16.msra.mxu1 %v763_v20 }
  0x60   :  { %683 = vmatprep.subr.bf16.mxu1 %v764_v21 }
  0x61   :  { %310 = vmatpush1.bf16.msra.mxu0 %v737_v22  ;;  %v765_v22 = vld [vmem:[#allocation8 + $0x20] sm:$0xff]  }
  0x62   :  { %311 = vmatprep.subr.bf16.mxu0 %v738_v23  ;;  %v766_v23 = vld [vmem:[#allocation8 + $0x68] sm:$0xff]  }
  0x63   :  { %684 = vmatpush3.bf16.msra.mxu1 %v765_v22 }
  0x64   :  { %685 = vmatprep.subr.bf16.mxu1 %v766_v23 }
  0x65   :  { %312 = vmatpush1.bf16.msra.mxu0 %v740_v24  ;;  %v767_v24 = vld [vmem:[#allocation8 + $0x28] sm:$0xff]  }
  0x66   :  { %313 = vmatprep.subr.bf16.mxu0 %v741_v25  ;;  %v768_v25 = vld [vmem:[#allocation8 + $0x70] sm:$0xff]  }
  0x67   :  { %686 = vmatpush3.bf16.msra.mxu1 %v767_v24 }
  0x68   :  { %687 = vmatprep.subr.bf16.mxu1 %v768_v25 }
  0x69   :  { %314 = vmatpush1.bf16.msra.mxu0 %v743_v26  ;;  %v769_v26 = vld [vmem:[#allocation8 + $0x30] sm:$0xff]  }
  0x6a   :  { %315 = vmatprep.subr.bf16.mxu0 %v744_v27  ;;  %v770_v27 = vld [vmem:[#allocation8 + $0x78] sm:$0xff]  }
  0x6b   :  { %688 = vmatpush3.bf16.msra.mxu1 %v769_v26 }
  0x6c   :  { %689 = vmatprep.subr.bf16.mxu1 %v770_v27 }
  0x6d   :  { %316 = vmatpush1.bf16.msra.mxu0 %v746_v28  ;;  %v771_v28 = vld [vmem:[#allocation8 + $0x38] sm:$0xff]  }
  0x6e   :  { %317 = vmatprep.subr.bf16.mxu0 %v747_v29 }
  0x6f   :  { %690 = vmatpush3.bf16.msra.mxu1 %v771_v28 }
  0x71   :  { %318 = vmatpush1.bf16.msra.mxu0 %v749_v30 }
  0x72   :  { %319 = vmatprep.subr.bf16.mxu0 %v750_v31 }
  0x75   :  { %320 = vmatpush1.bf16.msra.mxu0 %v752_v32 }
  0x78   :  { %322 = vmatmul.mubr.bf16.vlgmr.msra.gmra.mrb[0].mxu0 %v753_v33 }
 0x14b   :  { %v323_v41 = vpop.f32.mrb[0].mxu0 }
 0x14c   :  { %v324_v42 = vadd.f32 %v323_v41, %v112_v39  ;;  %v325_v43 = vpop.f32.mrb[1].mxu0 }
 0x14d   :  { %v326_v44 = vadd.f32 %v325_v43, %v116_v40  ;;  %v327_v45 = vpop.f32.mrb[2].mxu0 }
 0x14e   :  { %v336_v46 = vmul.f32 0.70710677, %v324_v42  ;;  %v328_v47 = vadd.f32 %v327_v45, %v112_v39  ;;  %v329_v48 = vpop.f32.mrb[3].mxu0  ;;  %v332_v55 = vmul.f32 0.5, %v324_v42 }
 0x14f   :  { %v337_v49 = vmul.f32 0.70710677, %v326_v44  ;;  %v330_v50 = vadd.f32 %v329_v48, %v116_v40  ;;  %v333_v58 = vmul.f32 0.5, %v326_v44 }
 0x150   :  { %772 = verf.f32 %v336_v46  ;;  %v338_v51 = vmul.f32 0.70710677, %v328_v47  ;;  %v334_v61 = vmul.f32 0.5, %v328_v47  ;;  %v390_v47 = vld [vmem:[%s1039_s3] sm:$0x3] }
 0x151   :  { %774 = verf.f32 %v337_v49  ;;  %v339_v52 = vmul.f32 0.70710677, %v330_v50  ;;  %v335_v0 = vmul.f32 0.5, %v330_v50 }
 0x152   :  { %776 = verf.f32 %v338_v51 }
 0x153   :  { %778 = verf.f32 %v339_v52  ;;  %v395_v52 = vrot.slane %v390_v47, %v975_v36 }
 0x15a   :  { %v773_v53 = vpop.eup %772 }
 0x15b   :  { %v775_v54 = vpop.eup %774  ;;  %v344_v56 = vadd.f32 1.0, %v773_v53  ;;  %v399_v53 = vrot.slane %v390_v47, %v980_v38 }
 0x15c   :  { %v777_v57 = vpop.eup %776  ;;  %v345_v59 = vadd.f32 1.0, %v775_v54  ;;  %v406_v54 = vld [vmem:[%s1040_s4] sm:$0x3] }
 0x15d   :  { %v779_v60 = vpop.eup %778  ;;  %v346_v62 = vadd.f32 1.0, %v777_v57  ;;  %v984_v63 = vmul.f32 %v344_v56, %v332_v55 }
 0x15e   :  { %v347_v1 = vadd.f32 1.0, %v779_v60  ;;  %v986_v2 = vmul.f32 %v345_v59, %v333_v58  ;;  %v411_v59 = vrot.slane %v406_v54, %v975_v36  ;;  %v415_v60 = vrot.slane %v406_v54, %v980_v38  ;;  %v658_v36 = vld [vmem:[%s1042_s6] ss:$0 sm:$0xff] }
 0x15f   :  { %v988_v3 = vmul.f32 %v346_v62, %v334_v61  ;;  %v360_v4 = vmul.f32 %v984_v63, %v984_v63 }
 0x160   :  { %v992_v5 = vmul.f32 %v347_v1, %v335_v0  ;;  %v352_v6 = vadd.f32 %v986_v2, %v984_v63  ;;  %v361_v7 = vmul.f32 %v986_v2, %v986_v2 }
 0x161   :  { %v362_v9 = vmul.f32 %v988_v3, %v988_v3 }
 0x162   :  { %353 = vadd.xlane.f32.xlu0 %v352_v6  ;;  %v364_v8 = vadd.f32 %v361_v7, %v360_v4  ;;  %v363_v10 = vmul.f32 %v992_v5, %v992_v5  ;;  %v355_v11 = vadd.f32 %v992_v5, %v988_v3 }
 0x164   :  { %365 = vadd.xlane.f32.xlu1 %v364_v8  ;;  %v367_v12 = vadd.f32 %v363_v10, %v362_v9 }
 0x166   :  { %356 = vadd.xlane.f32.xlu0 %v355_v11 }
 0x168   :  { %368 = vadd.xlane.f32.xlu1 %v367_v12 }
 0x1ef   :  { %v354_v29 = vpop.xlane.xlu0 %353 }
 0x1f0   :  { %v358_v30 = vmul.f32 0.03125, %v354_v29 }
 0x1f1   :  { %v366_v31 = vpop.xlane.xlu1 %365 }
 0x1f2   :  { %v370_v32 = vmul.f32 0.03125, %v366_v31  ;;  %v372_v33 = vmul.f32 %v358_v30, %v358_v30  ;;  %v378_v49 = vsub.f32 %v984_v63, %v358_v30  ;;  %v379_v50 = vsub.f32 %v986_v2, %v358_v30 }
 0x1f3   :  { %v357_v34 = vpop.xlane.xlu0 %356 }
 0x1f4   :  { %v374_v35 = vsub.f32 %v370_v32, %v372_v33  ;;  %v359_v37 = vmul.f32 0.03125, %v357_v34 }
 0x1f5   :  { %v369_v39 = vpop.xlane.xlu1 %368 }
 0x1f6   :  { %v376_v40 = vmax.f32 %v374_v35, 0.0  ;;  %v371_v41 = vmul.f32 0.03125, %v369_v39  ;;  %v373_v42 = vmul.f32 %v359_v37, %v359_v37  ;;  %v380_v56 = vsub.f32 %v988_v3, %v359_v37 }
 0x1f7   :  { %v381_v57 = vsub.f32 %v992_v5, %v359_v37 }
 0x1f8   :  { %v382_v43 = vadd.f32 1e-05, %v376_v40  ;;  %v375_v44 = vsub.f32 %v371_v41, %v373_v42 }
 0x1fa   :  { %780 = vrsqrt.f32 %v382_v43  ;;  %v377_v45 = vmax.f32 %v375_v44, 0.0 }
 0x1fc   :  { %v383_v46 = vadd.f32 1e-05, %v377_v45 }
 0x1fe   :  { %782 = vrsqrt.f32 %v383_v46 }
 0x204   :  { %v781_v48 = vpop.eup %780 }
 0x205   :  { %v387_v51 = vmul.f32 %v781_v48, %v379_v50  ;;  %v386_v55 = vmul.f32 %v781_v48, %v378_v49 }
 0x207   :  { %v403_v62 = vmul.f32 %v399_v53, %v387_v51  ;;  %v402_v0 = vmul.f32 %v395_v52, %v386_v55 }
 0x208   :  { %v783_v58 = vpop.eup %782 }
 0x209   :  { %v389_v61 = vmul.f32 %v783_v58, %v381_v57  ;;  %v388_v63 = vmul.f32 %v783_v58, %v380_v56  ;;  %v419_v4 = vadd.f32 %v415_v60, %v403_v62  ;;  %v418_v7 = vadd.f32 %v411_v59, %v402_v0 }
 0x20b   :  { %v405_v1 = vmul.f32 %v399_v53, %v389_v61  ;;  %v404_v2 = vmul.f32 %v395_v52, %v388_v63 }
 0x20d   :  { %v421_v6 = vadd.f32 %v415_v60, %v405_v1  ;;  %v420_v8 = vadd.f32 %v411_v59, %v404_v2 }
 0x20f   :  { %v423_v9 = vpack.c.bf16 %v421_v6, %v419_v4  ;;  %v422_v10 = vpack.c.bf16 %v420_v8, %v418_v7 }
 0x211   :  { %595 = vmatprep.mubr.bf16.mxu1 %v423_v9 }
 0x212   :  { %596 = vmatmul.mubr.bf16.vlgmr.msra.gmra.mrb[0].mxu1 %v422_v10 }
 0x2e5   :  { %v691_v3 = vpop.f32.mrb[0].mxu1 }
 0x2e6   :  { %v692_v38 = vpop.f32.mrb[1].mxu1 }
 0x2e7   :  { %v693_v5 = vadd.f32 %v692_v38, %v691_v3  ;;  %v694_v11 = vpop.f32.mrb[2].mxu1 }
 0x2e8   :  { %v695_v12 = vpop.f32.mrb[3].mxu1 }
 0x2e9   :  { %v598_v13 = vadd.f32 %v693_v5, %v658_v36  ;;  %v696_v14 = vadd.f32 %v695_v12, %v694_v11 }
 0x2eb   :  { %604 = vst [vmem:[#allocation9] sm:$0xff] %v598_v13  ;;  %v601_v15 = vadd.f32 %v696_v14, %v658_v36 }
 0x2ed   :  { %605 = vst [vmem:[#allocation9 + $0x8] sm:$0xff] %v601_v15 }
 0x2ee   :  { %861 = shalt.err (!%p858_p0)
}
 0x2ef   :  { %s862_s25 = scalar_lea.hbm %s1043_s7, 256 }
 0x2f0   :  { %p863_p1 = scmp.ne.s32.totalorder %s1043_s7, %s862_s25  ;;  %p866_p2 = scmp.lt.u32.totalorder %s862_s25, %s1043_s7 }
 0x2f2   :  { %p868_p3 = pnand %p866_p2, %p863_p1 }
 0x2f4   :  { %871 = shalt.err (!%p868_p3)
}
 0x2f5   :  { %617 = dma.vmem_to_hbm [thread:$0]  %s612_s23, 256, %s1043_s7, [#allocation5], %s880_s13, %s880_s13, %s881_s14  }
 0x2f6   :  { %876 = dma.done.wait [#allocation5], 256  }
 0x2f7   :  { %877 = vsyncadd [#allocation5], 4294967040 }
 0x2f8   :  { %621 = vsyncpa [#allocation4], 1 }
 0x2f9   :  { %622 = vsyncpa [#allocation7], 1 }
 0x2fa   :  { %623 = vsyncpa [#allocation5], 1 }

</bundles_post_ra>
